<compile_context>
chip_gen: v6e
topology: v6e:2x2x1
jax: 0.10.0
libtpu: 0.0.40
codegen_flags: <defaults>
</compile_context>

<pallas_src>
import jax
import jax.numpy as jnp
from jax.experimental import pallas as pl
from jax.experimental.pallas import tpu as pltpu


def _round_up(v, m):
    return (v + m - 1) // m * m


def choose_pack_rows(out_features, max_rows=8):
    """Smallest R (<= max_rows) with R*out_features a multiple of 128; else 1."""
    for r in range(1, max_rows + 1):
        if (r * out_features) % 128 == 0:
            return r
    return 1


def _linear_kernel(x_ref, w_ref, b_ref, o_ref):
    # x_ref: (TM, R*K)  w_ref: (R*K, R*N)  b_ref: (1, R*N) f32  o_ref: (TM, R*N)
    x = x_ref[...].astype(w_ref.dtype)            # cheap VPU cast, hidden by DMA
    acc = jnp.dot(x, w_ref[...], preferred_element_type=jnp.float32)
    o_ref[...] = (acc + b_ref[...]).astype(o_ref.dtype)


def pack_linear_params(weight, bias, *, pack_rows, compute_dtype=jnp.bfloat16):
    """One-time preprocessing (hoist out of the hot path; cache the result).

    weight: (N, K) in PyTorch nn.Linear layout, bias: (N,).
    Returns:
      w_packed: (R*K, R*N) block-diagonal (R copies of weight.T on the
                diagonal), cast to `compute_dtype` for the MXU.
      b_packed: (1, R*N) float32 (epilogue stays in f32).
    """
    N, K = weight.shape
    R = pack_rows
    wt = weight.astype(jnp.float32).T                              # (K, N)
    eye = jnp.eye(R, dtype=jnp.float32)
    w_packed = jnp.einsum("rs,kn->rksn", eye, wt).reshape(R * K, R * N)
    b_packed = jnp.tile(bias.astype(jnp.float32), (R,)).reshape(1, R * N)
    return w_packed.astype(compute_dtype), b_packed


def multi_conv1d_layer2_forward(x, w_packed, b_packed, *, pack_rows, tile_rows=1024):
    """Pallas forward for MultiConv1DLayer2.

    Args:
      x:         (B, F, C, W, H), any float dtype (cast to the weight dtype
                 in-kernel for the MXU).
      w_packed:  (R*K, R*N) from pack_linear_params (K = C*W*H, N = W*H).
      b_packed:  (1, R*N) float32.
      pack_rows: R used when packing the params.
      tile_rows: packed super-rows per grid step (auto-shrunk to fit VMEM).
    Returns:
      (B, F, 1, W, H) in x.dtype.
    """
    B, F, C, W, H = x.shape
    K = C * W * H
    N = W * H
    M = B * F
    R = pack_rows
    Ke, Ne = R * K, R * N
    assert w_packed.shape == (Ke, Ne)
    assert b_packed.shape == (1, Ne)

    x_bytes = jnp.dtype(x.dtype).itemsize
    w_bytes = jnp.dtype(w_packed.dtype).itemsize
    o_bytes = jnp.dtype(x.dtype).itemsize

    # Keep the double-buffered working set comfortably under the scoped-VMEM
    # default (32 MiB; v7x only has 64 MiB of physical VMEM per TC).
    def _tile_bytes(tm):
        return (2 * tm * (Ke * x_bytes + Ne * o_bytes)
                + 2 * (Ke * Ne * w_bytes + Ne * 4))
    while tile_rows > 8 and _tile_bytes(tile_rows) > 24 * 1024 * 1024:
        tile_rows //= 2

    # Packed-row geometry: pad M so it splits into equal, sublane-aligned tiles.
    Mp = pl.cdiv(M, R)                                   # packed rows needed
    num_tiles = pl.cdiv(Mp, tile_rows)
    TMp = _round_up(pl.cdiv(Mp, num_tiles), 8)           # packed rows per tile
    Mp_pad = _round_up(Mp, TMp)
    M_pad = Mp_pad * R
    grid_m = Mp_pad // TMp

    x2d = x.reshape(M, K)
    if M_pad != M:
        x2d = jnp.pad(x2d, ((0, M_pad - M), (0, 0)))
    # Free row-major reshape into lane-dense super-rows (no copy, no cast).
    xp = x2d.reshape(Mp_pad, Ke)

    cost = pl.CostEstimate(
        flops=2 * Mp_pad * Ke * Ne,
        transcendentals=0,
        bytes_accessed=(Mp_pad * Ke * x_bytes + Ke * Ne * w_bytes
                        + Ne * 4 + Mp_pad * Ne * o_bytes),
    )

    out_p = pl.pallas_call(
        _linear_kernel,
        out_shape=jax.ShapeDtypeStruct((Mp_pad, Ne), x.dtype),
        grid_spec=pltpu.PrefetchScalarGridSpec(
            num_scalar_prefetch=0,
            grid=(grid_m,),
            in_specs=[
                pl.BlockSpec((TMp, Ke), lambda i: (i, 0)),   # streamed / pipelined
                pl.BlockSpec((Ke, Ne), lambda i: (0, 0)),    # VMEM-resident weight
                pl.BlockSpec((1, Ne), lambda i: (0, 0)),     # VMEM-resident bias
            ],
            out_specs=pl.BlockSpec((TMp, Ne), lambda i: (i, 0)),
        ),
        compiler_params=pltpu.CompilerParams(
            # Independent output tiles -> shard the M axis across both v7x TCs.
            dimension_semantics=("parallel",),
        ),
        cost_estimate=cost,
    )(xp, w_packed, b_packed)

    out2d = out_p.reshape(M_pad, N)[:M]                  # free unpack + drop padding
    return out2d.reshape(B, F, 1, W, H)


def _reference_forward(x, weight, bias):
    B, F, C, W, H = x.shape
    x2d = x.reshape(B * F, C * W * H)
    y = x2d @ weight.T + bias
    return y.reshape(B, F, 1, W, H)


if __name__ == "__main__":
    # Module config: Linear(in_channels*target_h*target_w -> target_h*target_w).
    in_channels, target_h, target_w = 4, 8, 8
    B, F = 2, 64
    C, W, H = in_channels, target_w, target_h

    in_features = target_h * target_w * in_channels      # 256
    out_features = target_h * target_w                   # 64

    key = jax.random.PRNGKey(0)
    k_x, k_w, k_b = jax.random.split(key, 3)

    # Deterministic PyTorch-style uniform(-1/sqrt(fan_in), +) init.
    bound = 1.0 / (in_features ** 0.5)
    weight = jax.random.uniform(
        k_w, (out_features, in_features), jnp.float32, -bound, bound)
    bias = jax.random.uniform(
        k_b, (out_features,), jnp.float32, -bound, bound)
    x = jax.random.normal(k_x, (B, F, C, W, H), jnp.float32)

    ref = _reference_forward(x, weight, bias)

    R = choose_pack_rows(out_features)                    # -> 2 for N = 64

    # Production path: bf16 weight on the MXU, f32 accumulate + f32 bias epilogue.
    w_bf, b_bf = pack_linear_params(
        weight, bias, pack_rows=R, compute_dtype=jnp.bfloat16)
    out = multi_conv1d_layer2_forward(x, w_bf, b_bf, pack_rows=R)
    out = jax.block_until_ready(out)
    assert out.shape == (B, F, 1, W, H)
    assert jnp.allclose(out.astype(jnp.float32), ref, atol=3e-2, rtol=3e-2), (
        float(jnp.max(jnp.abs(out.astype(jnp.float32) - ref))))

    # f32 compute path (tighter numerics); small tile forces a multi-step
    # pipelined grid and exercises the row-padding / tiling logic.
    w_f32, b_f32 = pack_linear_params(
        weight, bias, pack_rows=R, compute_dtype=jnp.float32)
    out32 = multi_conv1d_layer2_forward(x, w_f32, b_f32, pack_rows=R, tile_rows=8)
    out32 = jax.block_until_ready(out32)
    assert out32.shape == (B, F, 1, W, H)
    # Tolerance allows for default MXU precision on either side.
    assert jnp.allclose(out32, ref, atol=1e-2, rtol=1e-2), (
        float(jnp.max(jnp.abs(out32 - ref))))

    print("KERNEL_OK")
</pallas_src>

<mosaic_0001>
module attributes {stable_mosaic.version = 11 : i64} {
  func.func @_linear_kernel(%arg0: i32, %arg1: memref<64x512xf32, #tpu.memory_space<vmem>>, %arg2: memref<512x128xbf16, #tpu.memory_space<vmem>>, %arg3: memref<1x128xf32, #tpu.memory_space<vmem>>, %arg4: memref<64x128xf32, #tpu.memory_space<vmem>>) attributes {dimension_semantics = [#tpu.dimension_semantics<parallel>], iteration_bounds = array<i64: 1>, scalar_prefetch = 0 : i64, scratch_operands = 0 : i64, tpu.core_type = #tpu.core_type<tc>, window_params = [{transform_indices = @transform_0, window_bounds = array<i64: 64, 512>}, {pipeline_mode = #tpu.pipeline_mode<synchronous>, transform_indices = @transform_1, window_bounds = array<i64: 512, 128>}, {pipeline_mode = #tpu.pipeline_mode<synchronous>, transform_indices = @transform_2, window_bounds = array<i64: 1, 128>}, {transform_indices = @transform_3, window_bounds = array<i64: 64, 128>}]} {
    %c0 = arith.constant 0 : index
    %c0_0 = arith.constant 0 : index
    %0 = vector.load %arg1[%c0, %c0_0] : memref<64x512xf32, #tpu.memory_space<vmem>>, vector<64x512xf32>
    %1 = arith.truncf %0 : vector<64x512xf32> to vector<64x512xbf16>
    %c0_1 = arith.constant 0 : index
    %c0_2 = arith.constant 0 : index
    %2 = vector.load %arg2[%c0_1, %c0_2] : memref<512x128xbf16, #tpu.memory_space<vmem>>, vector<512x128xbf16>
    %cst = arith.constant dense<0.000000e+00> : vector<64x128xf32>
    %3 = tpu.matmul %1, %2, %cst {dimension_numbers = #tpu.dot_dimension_numbers<[1], [0], [0], [1], [0, 0, 1, 1], [], []>} : vector<64x512xbf16>, vector<512x128xbf16>, vector<64x128xf32> -> vector<64x128xf32>
    %c0_3 = arith.constant 0 : index
    %c0_4 = arith.constant 0 : index
    %4 = vector.load %arg3[%c0_3, %c0_4] : memref<1x128xf32, #tpu.memory_space<vmem>>, vector<1x128xf32>
    %5 = vector.broadcast %4 : vector<1x128xf32> to vector<64x128xf32>
    %6 = arith.addf %3, %5 : vector<64x128xf32>
    %c0_5 = arith.constant 0 : index
    %c0_6 = arith.constant 0 : index
    %7 = vector.load %arg4[%c0_5, %c0_6] : memref<64x128xf32, #tpu.memory_space<vmem>>, vector<64x128xf32>
    tpu.vector_store %arg4[%c0_5, %c0_6], %6 {strides = array<i32>} : memref<64x128xf32, #tpu.memory_space<vmem>>, vector<64x128xf32>,
    return
  }
  func.func @transform_0(%arg0: i32) -> (i32, i32) {
    %c0_i32 = arith.constant 0 : i32
    %c0_i32_0 = arith.constant 0 : i32
    return %arg0, %c0_i32 : i32, i32
  }
  func.func @transform_1(%arg0: i32) -> (i32, i32) {
    %c0_i32 = arith.constant 0 : i32
    %c0_i32_0 = arith.constant 0 : i32
    %c0_i32_1 = arith.constant 0 : i32
    return %c0_i32, %c0_i32_0 : i32, i32
  }
  func.func @transform_2(%arg0: i32) -> (i32, i32) {
    %c0_i32 = arith.constant 0 : i32
    %c0_i32_0 = arith.constant 0 : i32
    %c0_i32_1 = arith.constant 0 : i32
    return %c0_i32, %c0_i32_0 : i32, i32
  }
  func.func @transform_3(%arg0: i32) -> (i32, i32) {
    %c0_i32 = arith.constant 0 : i32
    %c0_i32_0 = arith.constant 0 : i32
    return %arg0, %c0_i32 : i32, i32
  }
}

</mosaic_0001>

<bundles_post_ra>
// kernel: tpu_custom_call.1
= control target key start
LH: loop header
LB: loop body
LE: loop exit
PB: predicated region body
PF: predicated region fallthrough
CT: control target
= control target key end

     0   :  { %8 = vsyncpa [#allocation3], 0  ;;  %s782_s0 = inlined_call_operand.hbm [shape: f32[64,512], index: 0, kind: input, shape index: {}]   ;;  %s783_s1 = inlined_call_operand.hbm [shape: bf16[512,128], index: 1, kind: input, shape index: {}]   ;;  %s784_s2 = inlined_call_operand.vmem [shape: f32[1,128], index: 2, kind: input, shape index: {}]   ;;  %s785_s3 = inlined_call_operand.hbm [shape: f32[64,128], index: 3, kind: output, shape index: {}]  }
   0x1   :  { %9 = vsyncpa [#allocation6], 0 }
   0x2   :  { %10 = vsyncpa [#allocation4], 0  ;;  %s731_s12 = smov [#allocation2]  }
   0x3   :  { %s16_s13 = sshll.u32 %s731_s12, 4  ;;  %s17_s13 = int_to_ptr.vmem [resolvable:$true] %s16_s13 }
   0x4   :  { %s673_s14 = scalar_lea.vmem %s17_s13, 4096  ;;  %p678_p1 = scmp.lt.s32.totalorder %s17_s13, %s17_s13 }
   0x5   :  { %p674_p0 = scmp.ne.s32.totalorder %s17_s13, %s673_s14  ;;  %p679_p2 = scmp.lt.s32.totalorder %s673_s14, %s673_s14 }
   0x7   :  { %p680_p3 = por %p679_p2, %p678_p1 }
   0x9   :  { %p681_p4 = pnand %p680_p3, %p674_p0 }
   0xb   :  { %684 = shalt.err (!%p681_p4)
}
   0xc   :  { %s732_s15 = smov 512   ;;  %s733_s16 = smov 32  }
   0xd   :  { %22 = dma.hbm_to_vmem [thread:$0]  %s782_s0, 4096, %s17_s13, [#allocation3], %s732_s15, %s732_s15, %s733_s16  }
   0xe   :  { %s734_s19 = smov [#allocation5]  }
   0xf   :  { %s28_s20 = sshll.u32 %s734_s19, 4  ;;  %s29_s20 = int_to_ptr.vmem [resolvable:$true] %s28_s20 }
  0x10   :  { %s693_s21 = scalar_lea.vmem %s29_s20, 4096  ;;  %p698_p6 = scmp.lt.s32.totalorder %s29_s20, %s29_s20 }
  0x11   :  { %p694_p5 = scmp.ne.s32.totalorder %s29_s20, %s693_s21  ;;  %p699_p7 = scmp.lt.s32.totalorder %s693_s21, %s693_s21 }
  0x13   :  { %p700_p8 = por %p699_p7, %p698_p6 }
  0x15   :  { %p701_p9 = pnand %p700_p8, %p694_p5 }
  0x17   :  { %704 = shalt.err (!%p701_p9)
}
  0x18   :  { %s735_s22 = smov 64   ;;  %s736_s23 = smov 4  }
  0x19   :  { %34 = dma.hbm_to_vmem [thread:$0]  %s783_s1, 4096, %s29_s20, [#allocation6], %s735_s22, %s735_s22, %s736_s23  }
  0x1a   :  { %725 = dma.done.wait [#allocation3], 4096  }
  0x1b   :  { %726 = vsyncadd [#allocation3], 4294963200 }
  0x1c   :  { %727 = dma.done.wait [#allocation6], 4096  }
  0x1d   :  { %728 = vsyncadd [#allocation6], 4294963200  ;;  %v633_v0 = vld [vmem:[#allocation5 + $0x78] sm:$0xff]   ;;  %v637_v4 = vld [vmem:[#allocation5 + $0x70] sm:$0xff]  }
  0x1e   :  { %v634_v1 = vld [vmem:[#allocation5 + $0xf8] sm:$0xff]   ;;  %544 = vmatprep.subr.bf16.mxu0 %v633_v0  ;;  %v638_v5 = vld [vmem:[#allocation5 + $0xf0] sm:$0xff]   ;;  %v641_v8 = vld [vmem:[#allocation5 + $0x68] sm:$0xff]  }
  0x1f   :  { %v635_v2 = vld [vmem:[#allocation5 + $0x38] sm:$0xff]   ;;  %584 = vmatprep.subr.bf16.mxu1 %v634_v1  ;;  %v639_v6 = vld [vmem:[#allocation5 + $0x30] sm:$0xff]   ;;  %v642_v9 = vld [vmem:[#allocation5 + $0xe8] sm:$0xff]  }
  0x20   :  { %v636_v3 = vld [vmem:[#allocation5 + $0xb8] sm:$0xff]   ;;  %545 = vmatpush3.bf16.msra.mxu0 %v635_v2  ;;  %v640_v7 = vld [vmem:[#allocation5 + $0xb0] sm:$0xff]   ;;  %v643_v10 = vld [vmem:[#allocation5 + $0x28] sm:$0xff]  }
  0x21   :  { %585 = vmatpush3.bf16.msra.mxu1 %v636_v3  ;;  %546 = vmatprep.subr.bf16.mxu0 %v637_v4  ;;  %v644_v11 = vld [vmem:[#allocation5 + $0xa8] sm:$0xff]   ;;  %v645_v12 = vld [vmem:[#allocation5 + $0x60] sm:$0xff]   ;;  %v649_v16 = vld [vmem:[#allocation5 + $0x58] sm:$0xff]  }
  0x22   :  { %586 = vmatprep.subr.bf16.mxu1 %v638_v5  ;;  %v646_v13 = vld [vmem:[#allocation5 + $0xe0] sm:$0xff]   ;;  %v650_v17 = vld [vmem:[#allocation5 + $0xd8] sm:$0xff]   ;;  %v653_v20 = vld [vmem:[#allocation5 + $0x50] sm:$0xff]  }
  0x23   :  { %v647_v14 = vld [vmem:[#allocation5 + $0x20] sm:$0xff]   ;;  %v651_v18 = vld [vmem:[#allocation5 + $0x18] sm:$0xff]   ;;  %v654_v21 = vld [vmem:[#allocation5 + $0xd0] sm:$0xff]  }
  0x24   :  { %547 = vmatpush3.bf16.msra.mxu0 %v639_v6  ;;  %v648_v15 = vld [vmem:[#allocation5 + $0xa0] sm:$0xff]   ;;  %v652_v19 = vld [vmem:[#allocation5 + $0x98] sm:$0xff]   ;;  %v655_v22 = vld [vmem:[#allocation5 + $0x10] sm:$0xff]  }
  0x25   :  { %587 = vmatpush3.bf16.msra.mxu1 %v640_v7  ;;  %548 = vmatprep.subr.bf16.mxu0 %v641_v8  ;;  %v656_v23 = vld [vmem:[#allocation5 + $0x90] sm:$0xff]   ;;  %v657_v24 = vld [vmem:[#allocation5 + $0x48] sm:$0xff]   ;;  %v661_v28 = vld [vmem:[#allocation5 + $0x40] sm:$0xff]  }
  0x26   :  { %588 = vmatprep.subr.bf16.mxu1 %v642_v9  ;;  %v658_v25 = vld [vmem:[#allocation5 + $0xc8] sm:$0xff]   ;;  %v662_v29 = vld [vmem:[#allocation5 + $0xc0] sm:$0xff]   ;;  %v47_v34 = vld [vmem:[#allocation2 + $0x18] sm:$0xff] }
  0x27   :  { %v659_v26 = vld [vmem:[#allocation5 + $0x8] sm:$0xff]   ;;  %v663_v30 = vld [vmem:[#allocation5] sm:$0xff]   ;;  %v51_v36 = vld [vmem:[#allocation2 + $0x38] sm:$0xff] }
  0x28   :  { %549 = vmatpush3.bf16.msra.mxu0 %v643_v10  ;;  %v660_v27 = vld [vmem:[#allocation5 + $0x88] sm:$0xff]   ;;  %v664_v31 = vld [vmem:[#allocation5 + $0x80] sm:$0xff]   ;;  %v79_v39 = vpack.c.bf16 %v51_v36, %v47_v34  ;;  %v46_v41 = vld [vmem:[#allocation2 + $0x10] sm:$0xff] }
  0x29   :  { %589 = vmatpush3.bf16.msra.mxu1 %v644_v11  ;;  %550 = vmatprep.subr.bf16.mxu0 %v645_v12  ;;  %v45_v32 = vld [vmem:[#allocation2 + $0x8] sm:$0xff]  ;;  %v44_v37 = vld [vmem:[#allocation2] sm:$0xff]  ;;  %v50_v42 = vld [vmem:[#allocation2 + $0x30] sm:$0xff] }
  0x2a   :  { %590 = vmatprep.subr.bf16.mxu1 %v646_v13  ;;  %v49_v33 = vld [vmem:[#allocation2 + $0x28] sm:$0xff]  ;;  %v48_v38 = vld [vmem:[#allocation2 + $0x20] sm:$0xff]  ;;  %v78_v44 = vpack.c.bf16 %v50_v42, %v46_v41  ;;  %v55_v46 = vld [vmem:[#allocation2 + $0x58] sm:$0xff]  ;;  %452 = vmatprep.mubr.bf16.mxu1 %v79_v39 }
  0x2b   :  { %v77_v35 = vpack.c.bf16 %v49_v33, %v45_v32  ;;  %v76_v40 = vpack.c.bf16 %v48_v38, %v44_v37  ;;  %v53_v43 = vld [vmem:[#allocation2 + $0x48] sm:$0xff]  ;;  %v59_v47 = vld [vmem:[#allocation2 + $0x78] sm:$0xff]  ;;  %v52_v50 = vld [vmem:[#allocation2 + $0x40] sm:$0xff] }
  0x2c   :  { %551 = vmatpush3.bf16.msra.mxu0 %v647_v14  ;;  %v57_v45 = vld [vmem:[#allocation2 + $0x68] sm:$0xff]  ;;  %v83_v49 = vpack.c.bf16 %v59_v47, %v55_v46  ;;  %v56_v51 = vld [vmem:[#allocation2 + $0x60] sm:$0xff]  ;;  %v54_v52 = vld [vmem:[#allocation2 + $0x50] sm:$0xff] }
  0x2d   :  { %591 = vmatpush3.bf16.msra.mxu1 %v648_v15  ;;  %552 = vmatprep.subr.bf16.mxu0 %v649_v16  ;;  %v81_v48 = vpack.c.bf16 %v57_v45, %v53_v43  ;;  %v58_v53 = vld [vmem:[#allocation2 + $0x70] sm:$0xff]  ;;  %v61_v54 = vld [vmem:[#allocation2 + $0x88] sm:$0xff]  ;;  %v63_v56 = vld [vmem:[#allocation2 + $0x98] sm:$0xff]  ;;  %v80_v58 = vpack.c.bf16 %v56_v51, %v52_v50 }
  0x2e   :  { %592 = vmatprep.subr.bf16.mxu1 %v650_v17  ;;  %387 = vmatprep.mubr.bf16.mxu0 %v77_v35  ;;  %v65_v55 = vld [vmem:[#allocation2 + $0xa8] sm:$0xff]  ;;  %v67_v57 = vld [vmem:[#allocation2 + $0xb8] sm:$0xff]  ;;  %v82_v59 = vpack.c.bf16 %v58_v53, %v54_v52  ;;  %v60_v62 = vld [vmem:[#allocation2 + $0x80] sm:$0xff] }
  0x2f   :  { %v85_v60 = vpack.c.bf16 %v65_v55, %v61_v54  ;;  %v87_v61 = vpack.c.bf16 %v67_v57, %v63_v56  ;;  %v64_v63 = vld [vmem:[#allocation2 + $0xa0] sm:$0xff]  ;;  %v62_v0 = vld [vmem:[#allocation2 + $0x90] sm:$0xff]  ;;  %v69_v2 = vld [vmem:[#allocation2 + $0xc8] sm:$0xff] }
  0x30   :  { %553 = vmatpush3.bf16.msra.mxu0 %v651_v18  ;;  %v66_v1 = vld [vmem:[#allocation2 + $0xb0] sm:$0xff]  ;;  %v73_v3 = vld [vmem:[#allocation2 + $0xe8] sm:$0xff]  ;;  %v71_v4 = vld [vmem:[#allocation2 + $0xd8] sm:$0xff]  ;;  %v84_v6 = vpack.c.bf16 %v64_v63, %v60_v62 }
  0x31   :  { %593 = vmatpush3.bf16.msra.mxu1 %v652_v19  ;;  %554 = vmatprep.subr.bf16.mxu0 %v653_v20  ;;  %v75_v5 = vld [vmem:[#allocation2 + $0xf8] sm:$0xff]  ;;  %v86_v7 = vpack.c.bf16 %v66_v1, %v62_v0  ;;  %v89_v8 = vpack.c.bf16 %v73_v3, %v69_v2  ;;  %v68_v10 = vld [vmem:[#allocation2 + $0xc0] sm:$0xff]  ;;  %v70_v12 = vld [vmem:[#allocation2 + $0xd0] sm:$0xff] }
  0x32   :  { %594 = vmatprep.subr.bf16.mxu1 %v654_v21  ;;  %v91_v9 = vpack.c.bf16 %v75_v5, %v71_v4  ;;  %v72_v11 = vld [vmem:[#allocation2 + $0xe0] sm:$0xff]  ;;  %v74_v13 = vld [vmem:[#allocation2 + $0xf0] sm:$0xff] }
  0x33   :  { %v88_v14 = vpack.c.bf16 %v72_v11, %v68_v10  ;;  %v90_v15 = vpack.c.bf16 %v74_v13, %v70_v12  ;;  %v769_v18 = vld [vmem:[%s784_s2] ss:$0 sm:$0xff]  ;;  %s737_s2 = smov [#allocation7]  }
  0x34   :  { %555 = vmatpush3.bf16.msra.mxu0 %v655_v22  ;;  %s498_s26 = sshll.u32 %s737_s2, 4  ;;  %s499_s26 = int_to_ptr.vmem [resolvable:$true] %s498_s26 }
  0x35   :  { %595 = vmatpush3.bf16.msra.mxu1 %v656_v23  ;;  %556 = vmatprep.subr.bf16.mxu0 %v657_v24  ;;  %s705_s27 = scalar_lea.vmem %s499_s26, 1024  ;;  %p710_p11 = scmp.lt.s32.totalorder %s499_s26, %s499_s26 }
  0x36   :  { %596 = vmatprep.subr.bf16.mxu1 %v658_v25  ;;  %p706_p10 = scmp.ne.s32.totalorder %s499_s26, %s705_s27  ;;  %p711_p12 = scmp.lt.s32.totalorder %s705_s27, %s705_s27 }
  0x38   :  { %557 = vmatpush3.bf16.msra.mxu0 %v659_v26  ;;  %p712_p13 = por %p711_p12, %p710_p11 }
  0x39   :  { %597 = vmatpush3.bf16.msra.mxu1 %v660_v27  ;;  %558 = vmatprep.subr.bf16.mxu0 %v661_v28 }
  0x3a   :  { %598 = vmatprep.subr.bf16.mxu1 %v662_v29  ;;  %p713_p0 = pnand %p712_p13, %p706_p10 }
  0x3c   :  { %559 = vmatpush3.bf16.msra.mxu0 %v663_v30 }
  0x3d   :  { %599 = vmatpush3.bf16.msra.mxu1 %v664_v31 }
  0x3f   :  { %388 = vmatmul.mubr.bf16.vlgmr.msra.gmra.mxu0 %v76_v40 }
  0x40   :  { %453 = vmatmul.mubr.bf16.vlgmr.msra.gmra.mxu1 %v78_v44  ;;  %395 = vmatprep.mubr.bf16.mxu0 %v81_v48 }
  0x41   :  { %460 = vmatprep.mubr.bf16.mxu1 %v83_v49 }
  0x47   :  { %396 = vmatmul.mubr.bf16.gmra.mxu0 %v80_v58 }
  0x48   :  { %461 = vmatmul.mubr.bf16.gmra.mxu1 %v82_v59  ;;  %403 = vmatprep.mubr.bf16.mxu0 %v85_v60 }
  0x49   :  { %468 = vmatprep.mubr.bf16.mxu1 %v87_v61 }
  0x4f   :  { %404 = vmatmul.mubr.bf16.gmra.mxu0 %v84_v6 }
  0x50   :  { %469 = vmatmul.mubr.bf16.gmra.mxu1 %v86_v7  ;;  %411 = vmatprep.mubr.bf16.mxu0 %v89_v8 }
  0x51   :  { %476 = vmatprep.mubr.bf16.mxu1 %v91_v9 }
  0x57   :  { %412 = vmatmul.mubr.bf16.gmra.mxu0 %v88_v14 }
  0x58   :  { %477 = vmatmul.mubr.bf16.gmra.mxu1 %v90_v15 }
  0xff   :  { %v560_v16 = vpop.f32.mrf.mxu0 }
 0x100   :  { %v600_v17 = vpop.f32.mrf.mxu1 }
 0x101   :  { %v561_v19 = vpop.f32.mrf.mxu0 }
 0x102   :  { %v562_v20 = vadd.f32 %v561_v19, %v560_v16  ;;  %v601_v21 = vpop.f32.mrf.mxu1 }
 0x103   :  { %v563_v22 = vpop.f32.mrf.mxu0  ;;  %v602_v24 = vadd.f32 %v601_v21, %v600_v17 }
 0x104   :  { %v390_v23 = vadd.f32 %v562_v20, %v769_v18  ;;  %v603_v25 = vpop.f32.mrf.mxu1 }
 0x105   :  { %v564_v26 = vpop.f32.mrf.mxu0 }
 0x106   :  { %v455_v27 = vadd.f32 %v602_v24, %v390_v23  ;;  %v565_v28 = vadd.f32 %v564_v26, %v563_v22  ;;  %v604_v29 = vpop.f32.mrf.mxu1 }
 0x107   :  { %v566_v30 = vpop.f32.mrf.mxu0  ;;  %v605_v32 = vadd.f32 %v604_v29, %v603_v25 }
 0x108   :  { %485 = vst [vmem:[#allocation7] sm:$0xff] %v455_v27  ;;  %v393_v31 = vadd.f32 %v565_v28, %v769_v18  ;;  %v606_v33 = vpop.f32.mrf.mxu1 }
 0x109   :  { %v567_v34 = vpop.f32.mrf.mxu0 }
 0x10a   :  { %v458_v35 = vadd.f32 %v605_v32, %v393_v31  ;;  %v568_v36 = vadd.f32 %v567_v34, %v566_v30  ;;  %v607_v37 = vpop.f32.mrf.mxu1 }
 0x10b   :  { %v569_v38 = vpop.f32.mrf.mxu0  ;;  %v608_v40 = vadd.f32 %v607_v37, %v606_v33 }
 0x10c   :  { %486 = vst [vmem:[#allocation7 + $0x8] sm:$0xff] %v458_v35  ;;  %v398_v39 = vadd.f32 %v568_v36, %v769_v18  ;;  %v609_v41 = vpop.f32.mrf.mxu1 }
 0x10d   :  { %v570_v42 = vpop.f32.mrf.mxu0 }
 0x10e   :  { %v463_v43 = vadd.f32 %v608_v40, %v398_v39  ;;  %v571_v44 = vadd.f32 %v570_v42, %v569_v38  ;;  %v610_v45 = vpop.f32.mrf.mxu1 }
 0x10f   :  { %v572_v46 = vpop.f32.mrf.mxu0  ;;  %v611_v48 = vadd.f32 %v610_v45, %v609_v41 }
 0x110   :  { %487 = vst [vmem:[#allocation7 + $0x10] sm:$0xff] %v463_v43  ;;  %v401_v47 = vadd.f32 %v571_v44, %v769_v18  ;;  %v612_v49 = vpop.f32.mrf.mxu1 }
 0x111   :  { %v573_v50 = vpop.f32.mrf.mxu0 }
 0x112   :  { %v466_v51 = vadd.f32 %v611_v48, %v401_v47  ;;  %v574_v52 = vadd.f32 %v573_v50, %v572_v46  ;;  %v613_v53 = vpop.f32.mrf.mxu1 }
 0x113   :  { %v575_v54 = vpop.f32.mrf.mxu0  ;;  %v614_v56 = vadd.f32 %v613_v53, %v612_v49 }
 0x114   :  { %488 = vst [vmem:[#allocation7 + $0x18] sm:$0xff] %v466_v51  ;;  %v406_v55 = vadd.f32 %v574_v52, %v769_v18  ;;  %v615_v57 = vpop.f32.mrf.mxu1 }
 0x115   :  { %v576_v58 = vpop.f32.mrf.mxu0 }
 0x116   :  { %v471_v59 = vadd.f32 %v614_v56, %v406_v55  ;;  %v577_v60 = vadd.f32 %v576_v58, %v575_v54  ;;  %v616_v61 = vpop.f32.mrf.mxu1 }
 0x117   :  { %v578_v62 = vpop.f32.mrf.mxu0  ;;  %v617_v0 = vadd.f32 %v616_v61, %v615_v57 }
 0x118   :  { %489 = vst [vmem:[#allocation7 + $0x20] sm:$0xff] %v471_v59  ;;  %v409_v63 = vadd.f32 %v577_v60, %v769_v18  ;;  %v618_v1 = vpop.f32.mrf.mxu1 }
 0x119   :  { %v579_v2 = vpop.f32.mrf.mxu0 }
 0x11a   :  { %v474_v3 = vadd.f32 %v617_v0, %v409_v63  ;;  %v580_v4 = vadd.f32 %v579_v2, %v578_v62  ;;  %v619_v5 = vpop.f32.mrf.mxu1 }
 0x11b   :  { %v581_v6 = vpop.f32.mrf.mxu0  ;;  %v620_v8 = vadd.f32 %v619_v5, %v618_v1 }
 0x11c   :  { %490 = vst [vmem:[#allocation7 + $0x28] sm:$0xff] %v474_v3  ;;  %v414_v7 = vadd.f32 %v580_v4, %v769_v18  ;;  %v621_v9 = vpop.f32.mrf.mxu1 }
 0x11d   :  { %v582_v10 = vpop.f32.mrf.mxu0 }
 0x11e   :  { %v479_v11 = vadd.f32 %v620_v8, %v414_v7  ;;  %v583_v12 = vadd.f32 %v582_v10, %v581_v6  ;;  %v622_v13 = vpop.f32.mrf.mxu1 }
 0x11f   :  { %v623_v15 = vadd.f32 %v622_v13, %v621_v9 }
 0x120   :  { %491 = vst [vmem:[#allocation7 + $0x30] sm:$0xff] %v479_v11  ;;  %v417_v14 = vadd.f32 %v583_v12, %v769_v18 }
 0x122   :  { %v482_v16 = vadd.f32 %v623_v15, %v417_v14 }
 0x124   :  { %492 = vst [vmem:[#allocation7 + $0x38] sm:$0xff] %v482_v16 }
 0x125   :  { %716 = shalt.err (!%p713_p0)
}
 0x126   :  { %s738_s28 = smov 128   ;;  %s739_s29 = smov 8  }
 0x127   :  { %504 = dma.vmem_to_hbm [thread:$0]  %s499_s26, 1024, %s785_s3, [#allocation4], %s738_s28, %s738_s28, %s739_s29  }
 0x128   :  { %729 = dma.done.wait [#allocation4], 1024  }
 0x129   :  { %730 = vsyncadd [#allocation4], 4294966272 }
 0x12a   :  { %508 = vsyncpa [#allocation3], 1 }
 0x12b   :  { %509 = vsyncpa [#allocation6], 1 }
 0x12c   :  { %510 = vsyncpa [#allocation4], 1 }

</bundles_post_ra>
